<compile_context>
chip_gen: v7x
topology: tpu7x:2x2x1
jax: 0.10.0
libtpu: 0.0.40
codegen_flags: <defaults>
</compile_context>

<pallas_src>
import functools
import math

import jax
import jax.numpy as jnp
from jax import lax
from jax.experimental import pallas as pl
from jax.experimental.pallas import tpu as pltpu


def _round_up(x, m):
    return ((x + m - 1) // m) * m


def _pick_tm(B, cap=512):
    """Pick an M tile: big (amortizes per-step overhead, cuts weight re-reads)
    but with padding waste kept under ~10%."""
    Bp8 = _round_up(B, 8)
    if Bp8 <= cap:
        return Bp8  # whole (padded) batch in one tile row, zero extra padding
    for cand in (512, 256, 128, 64, 32, 16, 8):
        if cand > cap:
            continue
        Bp = _round_up(B, cand)
        if (Bp - B) / Bp <= 0.10:
            return cand
    return 8


def prepare_binarized_weight(weight, compute_dtype=jnp.bfloat16):
    """sign(weight) cast to the MXU dtype ({-1,0,+1} exact in bf16).

    Cache this across calls and pass weight_is_binarized=True to
    binarize_linear() to avoid re-reading the full f32 weight every call.
    """
    return jnp.sign(weight).astype(compute_dtype)


def _binarize_linear_kernel(x_ref, w_ref, b_ref, o_ref, *scratch,
                            compute_dtype, x_resident, tk):
    """One (tm, tn) output tile, accumulating over the K grid axis.

    x_ref  : (tm, tk) or (tm, Kp) activations in compute_dtype
    w_ref  : (tn, tk) pre-binarized weights in compute_dtype ({-1, 0, +1})
    b_ref  : (1,  tn) bias, f32, lane-dense
    o_ref  : (tm, tn) output tile (k-resident: same block index for all k)
    scratch: optional (tm, tn) f32 accumulator (only when o_ref is not f32)
    """
    acc_ref = scratch[0] if scratch else o_ref  # f32 out: accumulate in place
    k = pl.program_id(2)

    @pl.when(k == 0)
    def _init():
        acc_ref[...] = jnp.zeros_like(acc_ref)

    if x_resident:
        start = pl.multiple_of(k * tk, tk)
        x_tile = x_ref[:, pl.ds(start, tk)]
    else:
        x_tile = x_ref[...]
    x_tile = x_tile.astype(compute_dtype)  # no-op: wrapper already cast x
    # Contract in_features of x with in_features of w (nn.Linear (out, in)
    # layout) -- "transposed RHS" contraction, no explicit transpose.
    acc_ref[...] += lax.dot_general(
        x_tile,
        w_ref[...],
        dimension_numbers=(((1,), (1,)), ((), ())),
        preferred_element_type=jnp.float32,
    )

    @pl.when(k == pl.num_programs(2) - 1)
    def _finalize():
        out = acc_ref[...] + b_ref[...].astype(jnp.float32)
        o_ref[...] = out.astype(o_ref.dtype)


def binarize_linear(
    x,
    weight,
    bias=None,
    *,
    tm=None,
    tn=None,
    tk=None,
    compute_dtype=jnp.bfloat16,
    out_dtype=None,
    weight_is_binarized=False,
    x_resident=None,
):
    """BinarizeLinear forward: x @ sign(weight).T + bias.

    x      : (B, in_features)
    weight : (out_features, in_features)  (nn.Linear layout); pass the output
             of prepare_binarized_weight() with weight_is_binarized=True to
             skip the per-call sign/cast pass over the full weight.
    bias   : (out_features,) or None
    compute_dtype: MXU operand dtype. bf16 (default) keeps the binarized
             weights exact and only rounds activations (f32 accumulation);
             jnp.float32 for bit-faithful activation math.
    """
    B, K = x.shape
    N, Kw = weight.shape
    assert K == Kw, "in_features mismatch"
    out_dtype = x.dtype if out_dtype is None else out_dtype

    if bias is None:
        bias = jnp.zeros((N,), jnp.float32)

    # ---- weight binarization (torch.sign: sign(0)=0), stored narrow --------
    if weight_is_binarized:
        w_bin = weight.astype(compute_dtype)
    else:
        w_bin = jnp.sign(weight).astype(compute_dtype)
    # TODO(synk): on v7x, {-1,0,+1} are exact in fp8 (e4m3); storing w_bin as
    # fp8 would halve weight HBM traffic again iff the fp8(w) x bf16(x) MXU
    # operand combo lowers -- gated off here to stay portable across v5e/v6e.
    # TODO(synk): an int8 weight path only pays off if activations are also
    # int8-quantized (matching MXU int operands); not done here.

    # ---- activations cast once in the wrapper (halves x HBM DMA) -----------
    x_c = x if x.dtype == compute_dtype else x.astype(compute_dtype)

    # ---- tile selection (lane-dense: tm % 8 == 0, tn/tk % 128 == 0) --------
    if tm is None:
        tm = _pick_tm(B)
    else:
        tm = max(8, _round_up(min(tm, _round_up(B, 8)), 8))
    if tn is None:
        tn = min(512, _round_up(N, 128))
    else:
        tn = max(128, _round_up(min(tn, _round_up(N, 128)), 128))
    if tk is None:
        tk = min(1024, _round_up(K, 128))
    else:
        tk = max(128, _round_up(min(tk, _round_up(K, 128)), 128))

    Bp = _round_up(B, tm)
    Np = _round_up(N, tn)
    Kp = _round_up(K, tk)

    # v7x has 2 TensorCores: if both parallel axes collapse to one block, split
    # tn (only when it costs no extra padding) so both cores get work.
    if Bp // tm == 1 and Np // tn == 1 and Np >= 256 and (Np // 2) % 128 == 0:
        tn = Np // 2

    m_blocks, n_blocks, k_blocks = Bp // tm, Np // tn, Kp // tk

    # Keep the activation K-band resident across (j, k) when it is cheap:
    # x is then DMA'd once per output-row block instead of n*k times.
    x_itemsize = jnp.dtype(compute_dtype).itemsize
    if x_resident is None:
        x_resident = (
            n_blocks >= 2
            and k_blocks >= 2
            and tm * Kp * x_itemsize <= 4 * 1024 * 1024
        )

    # ---- zero padding (exact: padded K cols are 0 in both operands, padded
    # N/M rows-cols are sliced off below, padded bias entries are 0) ---------
    def pad2(a, r, c):
        return a if (r == 0 and c == 0) else jnp.pad(a, ((0, r), (0, c)))

    x_p = pad2(x_c, Bp - B, Kp - K)
    w_p = pad2(w_bin, Np - N, Kp - K)
    b_p = jnp.pad(bias.astype(jnp.float32), (0, Np - N)).reshape(1, Np)

    if x_resident:
        x_spec = pl.BlockSpec((tm, Kp), lambda i, j, k: (i, 0))
    else:
        x_spec = pl.BlockSpec((tm, tk), lambda i, j, k: (i, k))

    # f32 output: accumulate directly into the k-resident output block and
    # drop the scratch + finalize copy; keep scratch only for narrow outputs.
    acc_in_output = jnp.dtype(out_dtype) == jnp.dtype(jnp.float32)
    scratch_shapes = [] if acc_in_output else [pltpu.VMEM((tm, tn), jnp.float32)]

    kernel = functools.partial(
        _binarize_linear_kernel,
        compute_dtype=compute_dtype,
        x_resident=x_resident,
        tk=tk,
    )

    out_p = pl.pallas_call(
        kernel,
        out_shape=jax.ShapeDtypeStruct((Bp, Np), out_dtype),
        grid_spec=pltpu.PrefetchScalarGridSpec(
            num_scalar_prefetch=0,
            grid=(m_blocks, n_blocks, k_blocks),
            in_specs=[
                x_spec,                                            # activations
                pl.BlockSpec((tn, tk), lambda i, j, k: (j, k)),    # weights
                pl.BlockSpec((1, tn), lambda i, j, k: (0, j)),     # bias
            ],
            out_specs=pl.BlockSpec((tm, tn), lambda i, j, k: (i, j)),
            scratch_shapes=scratch_shapes,
        ),
        compiler_params=pltpu.CompilerParams(
            dimension_semantics=("parallel", "parallel", "arbitrary"),
            vmem_limit_bytes=32 * 1024 * 1024,  # safe on v5e/v6e/v7x
        ),
    )(x_p, w_p, b_p)

    return out_p[:B, :N]


if __name__ == "__main__":
    key = jax.random.PRNGKey(0)
    ks = jax.random.split(key, 9)

    def init_like_torch(kw, kb, out_f, in_f):
        stdv = 1.0 / math.sqrt(in_f)
        w = jax.random.uniform(kw, (out_f, in_f), jnp.float32, -stdv, stdv)
        b = jax.random.uniform(kb, (out_f,), jnp.float32, -stdv, stdv)
        return w, b

    def bf16_ref(x, w, b):
        # Matches the kernel's bf16-activation numerics (weights are exact).
        x_bf = x.astype(jnp.bfloat16).astype(jnp.float32)
        return (
            jnp.dot(x_bf, jnp.sign(w).T, precision=lax.Precision.HIGHEST)
            + b[None, :]
        )

    # --- Test 1: module-sized toy shape (K 32->128, N 64->128 padding path,
    #     single grid step), default bf16 compute path.
    in_f, out_f, batch = 32, 64, 8
    w1, b1 = init_like_torch(ks[0], ks[1], out_f, in_f)
    x1 = jax.random.normal(ks[2], (batch, in_f), jnp.float32)
    out1 = binarize_linear(x1, w1, b1)
    jax.block_until_ready(out1)
    assert out1.shape == (batch, out_f)
    assert jnp.allclose(out1, bf16_ref(x1, w1, b1), atol=2e-3, rtol=2e-3)

    # --- Test 2: multi-tile grid (2,2,2) with f32 output -> accumulate
    #     directly into the output block, resident activation K-band,
    #     pre-binarized (cached) weight path.
    in_f, out_f, batch = 256, 256, 16
    w2, b2 = init_like_torch(ks[3], ks[4], out_f, in_f)
    x2 = jax.random.normal(ks[5], (batch, in_f), jnp.float32)
    w2_bin = prepare_binarized_weight(w2)
    out2 = binarize_linear(
        x2, w2_bin, b2, tm=8, tn=128, tk=128, weight_is_binarized=True
    )
    jax.block_until_ready(out2)
    assert out2.shape == (batch, out_f)
    assert jnp.allclose(out2, bf16_ref(x2, w2, b2), atol=2e-3, rtol=2e-3)

    # --- Test 3: same shape family but non-resident x, bf16 output -> scratch
    #     accumulator + finalize cast path.
    in_f, out_f, batch = 256, 384, 16
    w3, b3 = init_like_torch(ks[6], ks[7], out_f, in_f)
    x3 = jax.random.normal(ks[8], (batch, in_f), jnp.float32)
    out3 = binarize_linear(
        x3, w3, b3, tm=8, tn=128, tk=128,
        out_dtype=jnp.bfloat16, x_resident=False,
    )
    jax.block_until_ready(out3)
    assert out3.shape == (batch, out_f)
    assert jnp.allclose(
        out3.astype(jnp.float32), bf16_ref(x3, w3, b3), atol=5e-2, rtol=1e-2
    )

    # --- Test 4: f32 compute path sanity run (bit-faithful activation math;
    #     loose tolerance only to stay robust to MXU f32 emulation details).
    out4 = binarize_linear(x1, w1, b1, compute_dtype=jnp.float32)
    jax.block_until_ready(out4)
    ref4 = jnp.dot(x1, jnp.sign(w1).T, precision=lax.Precision.HIGHEST) + b1[None, :]
    assert jnp.allclose(out4, ref4, atol=1e-1, rtol=5e-2)

    print("KERNEL_OK")
</pallas_src>

<mosaic_0001>
module attributes {stable_mosaic.version = 11 : i64} {
  func.func @_binarize_linear_kernel(%arg0: i32, %arg1: i32, %arg2: i32, %arg3: memref<8x128xbf16, #tpu.memory_space<vmem>>, %arg4: memref<128x128xbf16, #tpu.memory_space<vmem>>, %arg5: memref<1x128xf32, #tpu.memory_space<vmem>>, %arg6: memref<8x128xf32, #tpu.memory_space<vmem>>) attributes {dimension_semantics = [#tpu.dimension_semantics<parallel>, #tpu.dimension_semantics<parallel>, #tpu.dimension_semantics<arbitrary>], iteration_bounds = array<i64: 1, 1, 1>, scalar_prefetch = 0 : i64, scratch_operands = 0 : i64, tpu.core_type = #tpu.core_type<tc>, window_params = [{transform_indices = @transform_0, window_bounds = array<i64: 8, 128>}, {transform_indices = @transform_1, window_bounds = array<i64: 128, 128>}, {transform_indices = @transform_2, window_bounds = array<i64: 1, 128>}, {transform_indices = @transform_3, window_bounds = array<i64: 8, 128>}]} {
    %c0_i32 = arith.constant 0 : i32
    %0 = arith.cmpi eq, %arg2, %c0_i32 : i32
    %1 = arith.extui %0 : i1 to i32
    %c0_i32_0 = arith.constant 0 : i32
    %2 = arith.cmpi ne, %1, %c0_i32_0 : i32
    scf.if %2 {
      %cst_10 = arith.constant 0.000000e+00 : f32
      %12 = vector.broadcast %cst_10 : f32 to vector<8x128xf32>
      %c0_11 = arith.constant 0 : index
      %c0_12 = arith.constant 0 : index
      %13 = vector.load %arg6[%c0_11, %c0_12] : memref<8x128xf32, #tpu.memory_space<vmem>>, vector<8x128xf32>
      tpu.vector_store %arg6[%c0_11, %c0_12], %12 {strides = array<i32>} : memref<8x128xf32, #tpu.memory_space<vmem>>, vector<8x128xf32>,
    } else {
    }
    %c0 = arith.constant 0 : index
    %c0_1 = arith.constant 0 : index
    %3 = vector.load %arg3[%c0, %c0_1] : memref<8x128xbf16, #tpu.memory_space<vmem>>, vector<8x128xbf16>
    %c0_2 = arith.constant 0 : index
    %c0_3 = arith.constant 0 : index
    %4 = vector.load %arg6[%c0_2, %c0_3] : memref<8x128xf32, #tpu.memory_space<vmem>>, vector<8x128xf32>
    %c0_4 = arith.constant 0 : index
    %c0_5 = arith.constant 0 : index
    %5 = vector.load %arg4[%c0_4, %c0_5] : memref<128x128xbf16, #tpu.memory_space<vmem>>, vector<128x128xbf16>
    %cst = arith.constant dense<0.000000e+00> : vector<8x128xf32>
    %6 = tpu.matmul %3, %5, %cst {dimension_numbers = #tpu.dot_dimension_numbers<[1], [1], [0], [0], [0, 0, 1, 0], [], []>} : vector<8x128xbf16>, vector<128x128xbf16>, vector<8x128xf32> -> vector<8x128xf32>
    %7 = arith.addf %4, %6 : vector<8x128xf32>
    %c0_6 = arith.constant 0 : index
    %c0_7 = arith.constant 0 : index
    %8 = vector.load %arg6[%c0_6, %c0_7] : memref<8x128xf32, #tpu.memory_space<vmem>>, vector<8x128xf32>
    tpu.vector_store %arg6[%c0_6, %c0_7], %7 {strides = array<i32>} : memref<8x128xf32, #tpu.memory_space<vmem>>, vector<8x128xf32>,
    %c0_i32_8 = arith.constant 0 : i32
    %9 = arith.cmpi eq, %arg2, %c0_i32_8 : i32
    %10 = arith.extui %9 : i1 to i32
    %c0_i32_9 = arith.constant 0 : i32
    %11 = arith.cmpi ne, %10, %c0_i32_9 : i32
    scf.if %11 {
      %c0_10 = arith.constant 0 : index
      %c0_11 = arith.constant 0 : index
      %12 = vector.load %arg6[%c0_10, %c0_11] : memref<8x128xf32, #tpu.memory_space<vmem>>, vector<8x128xf32>
      %c0_12 = arith.constant 0 : index
      %c0_13 = arith.constant 0 : index
      %13 = vector.load %arg5[%c0_12, %c0_13] : memref<1x128xf32, #tpu.memory_space<vmem>>, vector<1x128xf32>
      %14 = vector.broadcast %13 : vector<1x128xf32> to vector<8x128xf32>
      %15 = arith.addf %12, %14 : vector<8x128xf32>
      %c0_14 = arith.constant 0 : index
      %c0_15 = arith.constant 0 : index
      %16 = vector.load %arg6[%c0_14, %c0_15] : memref<8x128xf32, #tpu.memory_space<vmem>>, vector<8x128xf32>
      tpu.vector_store %arg6[%c0_14, %c0_15], %15 {strides = array<i32>} : memref<8x128xf32, #tpu.memory_space<vmem>>, vector<8x128xf32>,
    } else {
    }
    return
  }
  func.func @transform_0(%arg0: i32, %arg1: i32, %arg2: i32) -> (i32, i32) {
    %c0_i32 = arith.constant 0 : i32
    return %arg0, %arg2 : i32, i32
  }
  func.func @transform_1(%arg0: i32, %arg1: i32, %arg2: i32) -> (i32, i32) {
    %c0_i32 = arith.constant 0 : i32
    return %arg1, %arg2 : i32, i32
  }
  func.func @transform_2(%arg0: i32, %arg1: i32, %arg2: i32) -> (i32, i32) {
    %c0_i32 = arith.constant 0 : i32
    %c0_i32_0 = arith.constant 0 : i32
    return %c0_i32, %arg1 : i32, i32
  }
  func.func @transform_3(%arg0: i32, %arg1: i32, %arg2: i32) -> (i32, i32) {
    %c0_i32 = arith.constant 0 : i32
    return %arg0, %arg1 : i32, i32
  }
}

</mosaic_0001>

<bundles_post_ra>
// kernel: tpu_custom_call.1
= control target key start
LH: loop header
LB: loop body
LE: loop exit
PB: predicated region body
PF: predicated region fallthrough
CT: control target
= control target key end

     0   :  { %8 = vsyncpa [#allocation3], 0  ;;  %s382_s0 = inlined_call_operand.hbm [shape: bf16[8,128], index: 0, kind: input, shape index: {}]   ;;  %s383_s1 = inlined_call_operand.hbm [shape: bf16[128,128], index: 1, kind: input, shape index: {}]   ;;  %s384_s2 = inlined_call_operand.vmem [shape: f32[1,128], index: 2, kind: input, shape index: {}]   ;;  %s385_s3 = inlined_call_operand.hbm [shape: f32[8,128], index: 3, kind: output, shape index: {}]  }
   0x1   :  { %9 = vsyncpa [#allocation6], 0 }
   0x2   :  { %10 = vsyncpa [#allocation4], 0  ;;  %s309_s12 = smov [#allocation2]   ;;  %s310_s14 = smov [#allocation5]  }
   0x3   :  { %s17_s13 = sshll.u32 %s309_s12, 4  ;;  %s26_s15 = sshll.u32 %s310_s14, 4  ;;  %s18_s13 = int_to_ptr.vmem [resolvable:$true] %s17_s13  ;;  %s336_s15 = int_to_ptr.vmem [resolvable:$true] %s26_s15 }
   0x4   :  { %s237_s18 = scalar_lea.hbm %s382_s0, 64 }
   0x5   :  { %p238_p0 = scmp.ne.s32.totalorder %s382_s0, %s237_s18  ;;  %p241_p1 = scmp.lt.u32.totalorder %s237_s18, %s382_s0 }
   0x7   :  { %p243_p2 = pnand %p241_p1, %p238_p0 }
   0x9   :  { %246 = shalt.err (!%p243_p2)
}
   0xa   :  { %s247_s23 = scalar_lea.vmem %s18_s13, 64  ;;  %p252_p4 = scmp.lt.s32.totalorder %s18_s13, %s18_s13 }
   0xb   :  { %p248_p3 = scmp.ne.s32.totalorder %s18_s13, %s247_s23  ;;  %p253_p5 = scmp.lt.s32.totalorder %s247_s23, %s247_s23 }
   0xd   :  { %p254_p6 = por %p253_p5, %p252_p4 }
   0xf   :  { %p255_p7 = pnand %p254_p6, %p248_p3 }
  0x11   :  { %258 = shalt.err (!%p255_p7)
}
  0x12   :  { %20 = dma.hbm_to_vmem [thread:$0]  %s382_s0, 64, %s18_s13, [#allocation3]  }
  0x13   :  { %s259_s28 = scalar_lea.hbm %s383_s1, 1024 }
  0x14   :  { %p260_p8 = scmp.ne.s32.totalorder %s383_s1, %s259_s28  ;;  %p263_p9 = scmp.lt.u32.totalorder %s259_s28, %s383_s1 }
  0x16   :  { %p265_p10 = pnand %p263_p9, %p260_p8 }
  0x18   :  { %268 = shalt.err (!%p265_p10)
}
  0x19   :  { %s269_s6 = scalar_lea.vmem %s336_s15, 1024  ;;  %p274_p12 = scmp.lt.s32.totalorder %s336_s15, %s336_s15 }
  0x1a   :  { %p270_p11 = scmp.ne.s32.totalorder %s336_s15, %s269_s6  ;;  %p275_p13 = scmp.lt.s32.totalorder %s269_s6, %s269_s6 }
  0x1c   :  { %p276_p0 = por %p275_p13, %p274_p12 }
  0x1e   :  { %p277_p1 = pnand %p276_p0, %p270_p11 }
  0x20   :  { %280 = shalt.err (!%p277_p1)
}
  0x21   :  { %s311_s0 = smov 64   ;;  %s312_s7 = smov 4  }
  0x22   :  { %32 = dma.hbm_to_vmem [thread:$0]  %s383_s1, 1024, %s336_s15, [#allocation6], %s311_s0, %s311_s0, %s312_s7  }
  0x23   :  { %303 = dma.done.wait [#allocation3], 64  }
  0x24   :  { %304 = vsyncadd [#allocation3], 4294967232 }
  0x25   :  { %305 = dma.done.wait [#allocation6], 1024  }
  0x26   :  { %306 = vsyncadd [#allocation6], 4294966272  ;;  %v313_v0 = vmov 0.0   ;;  %vm314_vm0 = vmmov 0   ;;  %v229_v1 = vld [vmem:[#allocation5] sm:$0xff]   ;;  %v230_v2 = vld [vmem:[#allocation5 + $0x8] sm:$0xff]  }
  0x27   :  { %202 = vmatprep.subr.bf16.mxu0 %v313_v0  ;;  %218 = vmatprep.mubr.msk.bf16.mxu0 %vm314_vm0, %v313_v0  ;;  %v231_v3 = vld [vmem:[#allocation5 + $0x10] sm:$0xff]   ;;  %v232_v4 = vld [vmem:[#allocation5 + $0x18] sm:$0xff]   ;;  %v233_v5 = vld [vmem:[#allocation5 + $0x20] sm:$0xff]   ;;  %s315_s11 = smov [#allocation7]  }
  0x28   :  { %203 = vmatpush3.bf16.xpose.msra.mxu0 %v229_v1  ;;  %v234_v6 = vld [vmem:[#allocation5 + $0x28] sm:$0xff]   ;;  %v235_v7 = vld [vmem:[#allocation5 + $0x30] sm:$0xff]   ;;  %v236_v8 = vld [vmem:[#allocation5 + $0x38] sm:$0xff]   ;;  %s174_s12 = sshll.u32 %s315_s11, 4  ;;  %s175_s12 = int_to_ptr.vmem [resolvable:$true] %s174_s12 }
  0x29   :  { %204 = vmatprep.subr.bf16.mxu0 %v313_v0  ;;  %v47_v9 = vld [vmem:[#allocation2] sm:$0xf]  ;;  %s281_s13 = scalar_lea.vmem %s175_s12, 128  ;;  %p286_p3 = scmp.lt.s32.totalorder %s175_s12, %s175_s12 }
  0x2a   :  { %v192_v11 = vld [vmem:[%s384_s2] ss:$0 sm:$0xff]  ;;  %p282_p2 = scmp.ne.s32.totalorder %s175_s12, %s281_s13  ;;  %p287_p4 = scmp.lt.s32.totalorder %s281_s13, %s281_s13 }
  0x2c   :  { %p288_p5 = por %p287_p4, %p286_p3 }
  0x2e   :  { %p289_p6 = pnand %p288_p5, %p282_p2 }
  0x30   :  { %205 = vmatpush3.bf16.xpose.msra.mxu0 %v230_v2 }
  0x31   :  { %206 = vmatprep.subr.bf16.mxu0 %v313_v0 }
  0x38   :  { %207 = vmatpush3.bf16.xpose.msra.mxu0 %v231_v3 }
  0x39   :  { %208 = vmatprep.subr.bf16.mxu0 %v313_v0 }
  0x40   :  { %209 = vmatpush3.bf16.xpose.msra.mxu0 %v232_v4 }
  0x41   :  { %210 = vmatprep.subr.bf16.mxu0 %v313_v0 }
  0x48   :  { %211 = vmatpush3.bf16.xpose.msra.mxu0 %v233_v5 }
  0x49   :  { %212 = vmatprep.subr.bf16.mxu0 %v313_v0 }
  0x50   :  { %213 = vmatpush3.bf16.xpose.msra.mxu0 %v234_v6 }
  0x51   :  { %214 = vmatprep.subr.bf16.mxu0 %v313_v0 }
  0x58   :  { %215 = vmatpush3.bf16.xpose.msra.mxu0 %v235_v7 }
  0x59   :  { %216 = vmatprep.subr.bf16.mxu0 %v313_v0 }
  0x60   :  { %217 = vmatpush3.bf16.xpose.msra.mxu0 %v236_v8 }
  0x67   :  { %219 = vmatmul.mubr.bf16.vlgmr.msra.gmra.mrb[0].mxu0 %v47_v9 }
 0x13a   :  { %v147_v10 = vpop.f32.mrb[0].mxu0 }
 0x13b   :  { %v220_v12 = vpop.f32.mrb[1].mxu0  ;;  %v166_v15 = vadd.f32 %v192_v11, %v147_v10 }
 0x13c   :  { %v150_v13 = vpop.f32.mrb[2].mxu0 }
 0x13d   :  { %v221_v14 = vpop.f32.mrb[3].mxu0  ;;  %167 = vst [vmem:[#allocation7] sm:$0xff] %v166_v15 }
 0x13e   :  { %292 = shalt.err (!%p289_p6)
}
 0x13f   :  { %s293_s16 = scalar_lea.hbm %s385_s3, 128 }
 0x140   :  { %p294_p7 = scmp.ne.s32.totalorder %s385_s3, %s293_s16  ;;  %p297_p8 = scmp.lt.u32.totalorder %s293_s16, %s385_s3 }
 0x142   :  { %p299_p9 = pnand %p297_p8, %p294_p7 }
 0x144   :  { %302 = shalt.err (!%p299_p9)
}
 0x145   :  { %177 = dma.vmem_to_hbm [thread:$0]  %s175_s12, 128, %s385_s3, [#allocation4]  }
 0x146   :  { %307 = dma.done.wait [#allocation4], 128  }
 0x147   :  { %308 = vsyncadd [#allocation4], 4294967168 }
 0x148   :  { %181 = vsyncpa [#allocation3], 1 }
 0x149   :  { %182 = vsyncpa [#allocation6], 1 }
 0x14a   :  { %183 = vsyncpa [#allocation4], 1 }

</bundles_post_ra>
